<compile_context>
chip_gen: v7x
topology: tpu7x:2x2x1
jax: 0.10.0
libtpu: 0.0.40
codegen_flags: <defaults>
</compile_context>

<pallas_src>
import functools

import jax
import jax.numpy as jnp
from jax.experimental import pallas as pl
from jax.experimental.pallas import tpu as pltpu

_LANE = 128      # vreg lane width (last dim must be a multiple of this)
_SUBLANE = 8     # f32 sublane width (second-to-last dim multiple)


def _round_up(n, m):
    return ((n + m - 1) // m) * m


def _leaky_relu(x, negative_slope=0.1):
    return jnp.where(x > 0, x, negative_slope * x)


def _pad2d(a, rows, cols, dtype=None):
    dtype = dtype or a.dtype
    out = jnp.zeros((rows, cols), dtype=dtype)
    return out.at[: a.shape[0], : a.shape[1]].set(a.astype(dtype))


def coupling_nice_kernel(n_layers, x_ref, *refs):
    """refs = (w1, b1, w2, b2, ..., wn, bn, o_ref).

    The 0/1 mask is folded into w1 / wn / bn by the wrapper, so the body is a
    pure MLP chain plus a residual add:
        out = x + MLP(x)
    which equals h1 + (h2 + a(z*mask)*(1-mask)) of the PyTorch module.
    """
    o_ref = refs[-1]
    wbs = refs[:-1]

    x = x_ref[...].astype(jnp.float32)            # (TB, D_pad)
    h = x
    for i in range(n_layers):
        w = wbs[2 * i][...]                       # (K_pad, N_pad), f32 or bf16
        b = wbs[2 * i + 1][...].astype(jnp.float32)   # (1, N_pad)
        h = jnp.dot(h.astype(w.dtype), w, preferred_element_type=jnp.float32) + b
        if i < n_layers - 1:                      # LeakyReLU after all but last
            h = _leaky_relu(h, 0.1)
    o_ref[...] = (x + h).astype(o_ref.dtype)


def coupling_layer_nice_forward(x, mask, weights, biases, *,
                                block_batch=256, weight_dtype=None):
    """Forward pass matching Coupling_layer_NICE.forward.

    weights[i] is (in_features, out_features); biases[i] is (1, out_features).
    `weight_dtype=jnp.bfloat16` halves weight VMEM/HBM traffic and doubles MXU
    throughput on v6e/v7x (accumulation stays f32).
    """
    orig_shape = x.shape
    z = x.reshape(x.shape[0], -1).astype(jnp.float32)      # (B, D)
    B, D = z.shape
    n_layers = len(weights)

    # ---- Fold the (binary) mask into first/last layers -------------------
    # NOTE: exact only for a 0/1 mask (which get_mask always produces).
    mask_flat = jnp.asarray(mask, jnp.float32).reshape(-1)  # (D,)
    comp = 1.0 - mask_flat
    w_f = [jnp.asarray(w, jnp.float32) for w in weights]
    b_f = [jnp.asarray(b, jnp.float32).reshape(1, -1) for b in biases]
    w_f[0] = w_f[0] * mask_flat[:, None]        # row-scale: (z*mask)@W == z@(mask*W)
    w_f[-1] = w_f[-1] * comp[None, :]           # col-scale: (..)* (1-mask)
    b_f[-1] = b_f[-1] * comp[None, :]

    # ---- Pad every dim to lane/sublane multiples --------------------------
    w_dtype = weight_dtype or jnp.float32
    ws_p, bs_p = [], []
    for w, b in zip(w_f, b_f):
        kin, kout = w.shape
        kin_p, kout_p = _round_up(kin, _LANE), _round_up(kout, _LANE)
        ws_p.append(_pad2d(w, kin_p, kout_p, dtype=w_dtype))
        bs_p.append(_pad2d(b, 1, kout_p, dtype=jnp.float32))

    D_pad = ws_p[0].shape[0]
    block_batch = max(_SUBLANE, _round_up(block_batch, _SUBLANE))
    tb = min(block_batch, _round_up(B, _SUBLANE))
    B_pad = _round_up(B, tb)
    z_pad = _pad2d(z, B_pad, D_pad, dtype=jnp.float32)

    grid = (B_pad // tb,)

    # ---- Block specs -------------------------------------------------------
    x_spec = pl.BlockSpec((tb, D_pad), lambda i: (i, 0))
    in_specs = [x_spec]
    inputs = [z_pad]
    for w, b in zip(ws_p, bs_p):
        in_specs.append(pl.BlockSpec(w.shape, lambda i: (0, 0)))   # resident
        in_specs.append(pl.BlockSpec(b.shape, lambda i: (0, 0)))   # resident
        inputs.append(w)
        inputs.append(b)
    out_spec = pl.BlockSpec((tb, D_pad), lambda i: (i, 0))

    # ---- VMEM budget (raise scoped limit only when actually needed) -------
    def _nbytes(a):
        return a.size * jnp.dtype(a.dtype).itemsize

    max_hidden = max(w.shape[1] for w in ws_p)
    est_bytes = (sum(_nbytes(w) for w in ws_p) + sum(_nbytes(b) for b in bs_p)
                 + 2 * 2 * tb * D_pad * 4          # double-buffered x and out tiles
                 + 2 * tb * max_hidden * 4)        # activation intermediates
    cp_kwargs = dict(dimension_semantics=("parallel",))
    if est_bytes > (32 << 20):
        cp_kwargs["vmem_limit_bytes"] = int(min(64 << 20, est_bytes * 3 // 2))
    compiler_params = pltpu.CompilerParams(**cp_kwargs)

    kernel = functools.partial(coupling_nice_kernel, n_layers)
    out_pad = pl.pallas_call(
        kernel,
        out_shape=jax.ShapeDtypeStruct((B_pad, D_pad), z.dtype),
        grid=grid,
        in_specs=in_specs,
        out_specs=out_spec,
        compiler_params=compiler_params,
    )(*inputs)

    return out_pad[:B, :D].reshape(orig_shape)


def get_mask(input_dim, mask_type):
    mask = jnp.zeros((input_dim,), dtype=jnp.float32)
    if mask_type == 0:
        mask = mask.at[::2].set(1.0)
    elif mask_type == 1:
        mask = mask.at[1::2].set(1.0)
    return mask.reshape(1, -1)


def init_params(key, input_dim, n_layers, hidden_dim):
    """Deterministic init mimicking torch.nn.Linear default U[-1/sqrt(fan_in), 1/sqrt(fan_in)].

    Weights are stored as (in_features, out_features)."""
    dims = [input_dim] + [hidden_dim] * (n_layers - 1) + [input_dim]
    weights, biases = [], []
    for i in range(n_layers):
        fan_in, fan_out = dims[i], dims[i + 1]
        key, kw, kb = jax.random.split(key, 3)
        bound = 1.0 / jnp.sqrt(fan_in)
        w = jax.random.uniform(kw, (fan_in, fan_out), jnp.float32, -bound, bound)
        b = jax.random.uniform(kb, (1, fan_out), jnp.float32, -bound, bound)
        weights.append(w)
        biases.append(b)
    return weights, biases


def reference_forward(x, mask, weights, biases):
    """Pure-JAX reference matching the PyTorch module (unfolded, unpadded)."""
    z = x.reshape(x.shape[0], -1)
    h1 = z * mask
    h2 = z * (1.0 - mask)
    h = h1
    n = len(weights)
    for i in range(n):
        h = h @ weights[i] + biases[i]
        if i < n - 1:
            h = _leaky_relu(h, 0.1)
    m = h * (1.0 - mask)
    out = h1 + (h2 + m)
    return out.reshape(x.shape)


if __name__ == "__main__":
    # NOTE: at these toy sizes the call is launch/DMA-latency bound; the tiling
    # above is what matters at realistic B / D / hidden_dim.
    input_dim = 16
    hidden_dim = 32
    n_layers = 4
    mask_type = 0
    batch = 2

    key = jax.random.PRNGKey(0)
    key, kx, kp = jax.random.split(key, 3)

    x = jax.random.normal(kx, (batch, input_dim), dtype=jnp.float32)
    mask = get_mask(input_dim, mask_type)
    weights, biases = init_params(kp, input_dim, n_layers, hidden_dim)

    out = coupling_layer_nice_forward(x, mask, weights, biases)
    out = jax.block_until_ready(out)

    ref = reference_forward(x, mask, weights, biases)
    assert out.shape == x.shape
    assert jnp.allclose(out, ref, atol=1e-5, rtol=1e-5), float(jnp.max(jnp.abs(out - ref)))

    print("KERNEL_OK")
</pallas_src>

<mosaic_0001>
module attributes {stable_mosaic.version = 11 : i64} {
  func.func @coupling_nice_kernel(%arg0: i32, %arg1: memref<8x128xf32, #tpu.memory_space<vmem>>, %arg2: memref<128x128xf32, #tpu.memory_space<vmem>>, %arg3: memref<1x128xf32, #tpu.memory_space<vmem>>, %arg4: memref<128x128xf32, #tpu.memory_space<vmem>>, %arg5: memref<1x128xf32, #tpu.memory_space<vmem>>, %arg6: memref<128x128xf32, #tpu.memory_space<vmem>>, %arg7: memref<1x128xf32, #tpu.memory_space<vmem>>, %arg8: memref<128x128xf32, #tpu.memory_space<vmem>>, %arg9: memref<1x128xf32, #tpu.memory_space<vmem>>, %arg10: memref<8x128xf32, #tpu.memory_space<vmem>>) attributes {dimension_semantics = [#tpu.dimension_semantics<parallel>], iteration_bounds = array<i64: 1>, scalar_prefetch = 0 : i64, scratch_operands = 0 : i64, tpu.core_type = #tpu.core_type<tc>, window_params = [{transform_indices = @transform_0, window_bounds = array<i64: 8, 128>}, {pipeline_mode = #tpu.pipeline_mode<synchronous>, transform_indices = @transform_1, window_bounds = array<i64: 128, 128>}, {pipeline_mode = #tpu.pipeline_mode<synchronous>, transform_indices = @transform_2, window_bounds = array<i64: 1, 128>}, {pipeline_mode = #tpu.pipeline_mode<synchronous>, transform_indices = @transform_3, window_bounds = array<i64: 128, 128>}, {pipeline_mode = #tpu.pipeline_mode<synchronous>, transform_indices = @transform_4, window_bounds = array<i64: 1, 128>}, {pipeline_mode = #tpu.pipeline_mode<synchronous>, transform_indices = @transform_5, window_bounds = array<i64: 128, 128>}, {pipeline_mode = #tpu.pipeline_mode<synchronous>, transform_indices = @transform_6, window_bounds = array<i64: 1, 128>}, {pipeline_mode = #tpu.pipeline_mode<synchronous>, transform_indices = @transform_7, window_bounds = array<i64: 128, 128>}, {pipeline_mode = #tpu.pipeline_mode<synchronous>, transform_indices = @transform_8, window_bounds = array<i64: 1, 128>}, {transform_indices = @transform_9, window_bounds = array<i64: 8, 128>}]} {
    %c0 = arith.constant 0 : index
    %c0_0 = arith.constant 0 : index
    %0 = vector.load %arg1[%c0, %c0_0] : memref<8x128xf32, #tpu.memory_space<vmem>>, vector<8x128xf32>
    %c0_1 = arith.constant 0 : index
    %c0_2 = arith.constant 0 : index
    %1 = vector.load %arg2[%c0_1, %c0_2] : memref<128x128xf32, #tpu.memory_space<vmem>>, vector<128x128xf32>
    %c0_3 = arith.constant 0 : index
    %c0_4 = arith.constant 0 : index
    %2 = vector.load %arg3[%c0_3, %c0_4] : memref<1x128xf32, #tpu.memory_space<vmem>>, vector<1x128xf32>
    %cst = arith.constant dense<0.000000e+00> : vector<8x128xf32>
    %3 = tpu.matmul %0, %1, %cst {dimension_numbers = #tpu.dot_dimension_numbers<[1], [0], [0], [1], [0, 0, 1, 1], [], []>} : vector<8x128xf32>, vector<128x128xf32>, vector<8x128xf32> -> vector<8x128xf32>
    %4 = vector.broadcast %2 : vector<1x128xf32> to vector<8x128xf32>
    %5 = arith.addf %3, %4 : vector<8x128xf32>
    %cst_5 = arith.constant 0.000000e+00 : f32
    %6 = vector.broadcast %cst_5 : f32 to vector<8x128xf32>
    %7 = arith.cmpf ogt, %5, %6 : vector<8x128xf32>
    %cst_6 = arith.constant 1.000000e-01 : f32
    %8 = vector.broadcast %cst_6 : f32 to vector<8x128xf32>
    %9 = arith.mulf %8, %5 : vector<8x128xf32>
    %10 = arith.select %7, %5, %9 : vector<8x128xi1>, vector<8x128xf32>
    %c0_7 = arith.constant 0 : index
    %c0_8 = arith.constant 0 : index
    %11 = vector.load %arg4[%c0_7, %c0_8] : memref<128x128xf32, #tpu.memory_space<vmem>>, vector<128x128xf32>
    %c0_9 = arith.constant 0 : index
    %c0_10 = arith.constant 0 : index
    %12 = vector.load %arg5[%c0_9, %c0_10] : memref<1x128xf32, #tpu.memory_space<vmem>>, vector<1x128xf32>
    %cst_11 = arith.constant dense<0.000000e+00> : vector<8x128xf32>
    %13 = tpu.matmul %10, %11, %cst_11 {dimension_numbers = #tpu.dot_dimension_numbers<[1], [0], [0], [1], [0, 0, 1, 1], [], []>} : vector<8x128xf32>, vector<128x128xf32>, vector<8x128xf32> -> vector<8x128xf32>
    %14 = vector.broadcast %12 : vector<1x128xf32> to vector<8x128xf32>
    %15 = arith.addf %13, %14 : vector<8x128xf32>
    %cst_12 = arith.constant 0.000000e+00 : f32
    %16 = vector.broadcast %cst_12 : f32 to vector<8x128xf32>
    %17 = arith.cmpf ogt, %15, %16 : vector<8x128xf32>
    %cst_13 = arith.constant 1.000000e-01 : f32
    %18 = vector.broadcast %cst_13 : f32 to vector<8x128xf32>
    %19 = arith.mulf %18, %15 : vector<8x128xf32>
    %20 = arith.select %17, %15, %19 : vector<8x128xi1>, vector<8x128xf32>
    %c0_14 = arith.constant 0 : index
    %c0_15 = arith.constant 0 : index
    %21 = vector.load %arg6[%c0_14, %c0_15] : memref<128x128xf32, #tpu.memory_space<vmem>>, vector<128x128xf32>
    %c0_16 = arith.constant 0 : index
    %c0_17 = arith.constant 0 : index
    %22 = vector.load %arg7[%c0_16, %c0_17] : memref<1x128xf32, #tpu.memory_space<vmem>>, vector<1x128xf32>
    %cst_18 = arith.constant dense<0.000000e+00> : vector<8x128xf32>
    %23 = tpu.matmul %20, %21, %cst_18 {dimension_numbers = #tpu.dot_dimension_numbers<[1], [0], [0], [1], [0, 0, 1, 1], [], []>} : vector<8x128xf32>, vector<128x128xf32>, vector<8x128xf32> -> vector<8x128xf32>
    %24 = vector.broadcast %22 : vector<1x128xf32> to vector<8x128xf32>
    %25 = arith.addf %23, %24 : vector<8x128xf32>
    %cst_19 = arith.constant 0.000000e+00 : f32
    %26 = vector.broadcast %cst_19 : f32 to vector<8x128xf32>
    %27 = arith.cmpf ogt, %25, %26 : vector<8x128xf32>
    %cst_20 = arith.constant 1.000000e-01 : f32
    %28 = vector.broadcast %cst_20 : f32 to vector<8x128xf32>
    %29 = arith.mulf %28, %25 : vector<8x128xf32>
    %30 = arith.select %27, %25, %29 : vector<8x128xi1>, vector<8x128xf32>
    %c0_21 = arith.constant 0 : index
    %c0_22 = arith.constant 0 : index
    %31 = vector.load %arg8[%c0_21, %c0_22] : memref<128x128xf32, #tpu.memory_space<vmem>>, vector<128x128xf32>
    %c0_23 = arith.constant 0 : index
    %c0_24 = arith.constant 0 : index
    %32 = vector.load %arg9[%c0_23, %c0_24] : memref<1x128xf32, #tpu.memory_space<vmem>>, vector<1x128xf32>
    %cst_25 = arith.constant dense<0.000000e+00> : vector<8x128xf32>
    %33 = tpu.matmul %30, %31, %cst_25 {dimension_numbers = #tpu.dot_dimension_numbers<[1], [0], [0], [1], [0, 0, 1, 1], [], []>} : vector<8x128xf32>, vector<128x128xf32>, vector<8x128xf32> -> vector<8x128xf32>
    %34 = vector.broadcast %32 : vector<1x128xf32> to vector<8x128xf32>
    %35 = arith.addf %33, %34 : vector<8x128xf32>
    %36 = arith.addf %0, %35 : vector<8x128xf32>
    %c0_26 = arith.constant 0 : index
    %c0_27 = arith.constant 0 : index
    %37 = vector.load %arg10[%c0_26, %c0_27] : memref<8x128xf32, #tpu.memory_space<vmem>>, vector<8x128xf32>
    tpu.vector_store %arg10[%c0_26, %c0_27], %36 {strides = array<i32>} : memref<8x128xf32, #tpu.memory_space<vmem>>, vector<8x128xf32>,
    return
  }
  func.func @transform_0(%arg0: i32) -> (i32, i32) {
    %c0_i32 = arith.constant 0 : i32
    %c0_i32_0 = arith.constant 0 : i32
    return %arg0, %c0_i32 : i32, i32
  }
  func.func @transform_1(%arg0: i32) -> (i32, i32) {
    %c0_i32 = arith.constant 0 : i32
    %c0_i32_0 = arith.constant 0 : i32
    %c0_i32_1 = arith.constant 0 : i32
    return %c0_i32, %c0_i32_0 : i32, i32
  }
  func.func @transform_2(%arg0: i32) -> (i32, i32) {
    %c0_i32 = arith.constant 0 : i32
    %c0_i32_0 = arith.constant 0 : i32
    %c0_i32_1 = arith.constant 0 : i32
    return %c0_i32, %c0_i32_0 : i32, i32
  }
  func.func @transform_3(%arg0: i32) -> (i32, i32) {
    %c0_i32 = arith.constant 0 : i32
    %c0_i32_0 = arith.constant 0 : i32
    %c0_i32_1 = arith.constant 0 : i32
    return %c0_i32, %c0_i32_0 : i32, i32
  }
  func.func @transform_4(%arg0: i32) -> (i32, i32) {
    %c0_i32 = arith.constant 0 : i32
    %c0_i32_0 = arith.constant 0 : i32
    %c0_i32_1 = arith.constant 0 : i32
    return %c0_i32, %c0_i32_0 : i32, i32
  }
  func.func @transform_5(%arg0: i32) -> (i32, i32) {
    %c0_i32 = arith.constant 0 : i32
    %c0_i32_0 = arith.constant 0 : i32
    %c0_i32_1 = arith.constant 0 : i32
    return %c0_i32, %c0_i32_0 : i32, i32
  }
  func.func @transform_6(%arg0: i32) -> (i32, i32) {
    %c0_i32 = arith.constant 0 : i32
    %c0_i32_0 = arith.constant 0 : i32
    %c0_i32_1 = arith.constant 0 : i32
    return %c0_i32, %c0_i32_0 : i32, i32
  }
  func.func @transform_7(%arg0: i32) -> (i32, i32) {
    %c0_i32 = arith.constant 0 : i32
    %c0_i32_0 = arith.constant 0 : i32
    %c0_i32_1 = arith.constant 0 : i32
    return %c0_i32, %c0_i32_0 : i32, i32
  }
  func.func @transform_8(%arg0: i32) -> (i32, i32) {
    %c0_i32 = arith.constant 0 : i32
    %c0_i32_0 = arith.constant 0 : i32
    %c0_i32_1 = arith.constant 0 : i32
    return %c0_i32, %c0_i32_0 : i32, i32
  }
  func.func @transform_9(%arg0: i32) -> (i32, i32) {
    %c0_i32 = arith.constant 0 : i32
    %c0_i32_0 = arith.constant 0 : i32
    return %arg0, %c0_i32 : i32, i32
  }
}

</mosaic_0001>

<bundles_post_ra>
// kernel: tpu_custom_call.1
= control target key start
LH: loop header
LB: loop body
LE: loop exit
PB: predicated region body
PF: predicated region fallthrough
CT: control target
= control target key end

     0   :  { %14 = vsyncpa [#allocation3], 0  ;;  %s1160_s0 = inlined_call_operand.hbm [shape: f32[8,128], index: 0, kind: input, shape index: {}]   ;;  %s1161_s1 = inlined_call_operand.hbm [shape: f32[128,128], index: 1, kind: input, shape index: {}]   ;;  %s1162_s2 = inlined_call_operand.vmem [shape: f32[1,128], index: 2, kind: input, shape index: {}]   ;;  %s1163_s3 = inlined_call_operand.hbm [shape: f32[128,128], index: 3, kind: input, shape index: {}]   ;;  %s1164_s4 = inlined_call_operand.vmem [shape: f32[1,128], index: 4, kind: input, shape index: {}]   ;;  %s1165_s5 = inlined_call_operand.hbm [shape: f32[128,128], index: 5, kind: input, shape index: {}]   ;;  %s1166_s6 = inlined_call_operand.vmem [shape: f32[1,128], index: 6, kind: input, shape index: {}]   ;;  %s1167_s7 = inlined_call_operand.hbm [shape: f32[128,128], index: 7, kind: input, shape index: {}]   ;;  %s1168_s8 = inlined_call_operand.vmem [shape: f32[1,128], index: 8, kind: input, shape index: {}]   ;;  %s1169_s9 = inlined_call_operand.hbm [shape: f32[8,128], index: 9, kind: output, shape index: {}]  }
   0x1   :  { %15 = vsyncpa [#allocation6], 0 }
   0x2   :  { %16 = vsyncpa [#allocation9], 0 }
   0x3   :  { %17 = vsyncpa [#allocation4], 0  ;;  %s959_s30 = smov [#allocation5]   ;;  %s819_s13 = scalar_lea.hbm %s1161_s1, 2048 }
   0x4   :  { %s33_s10 = sshll.u32 %s959_s30, 4  ;;  %p820_p0 = scmp.ne.s32.totalorder %s1161_s1, %s819_s13  ;;  %s34_s10 = int_to_ptr.vmem [resolvable:$true] %s33_s10 }
   0x5   :  { %p823_p1 = scmp.lt.u32.totalorder %s819_s13, %s1161_s1 }
   0x7   :  { %p825_p2 = pnand %p823_p1, %p820_p0 }
   0x9   :  { %828 = shalt.err (!%p825_p2)
}
   0xa   :  { %s829_s18 = scalar_lea.vmem %s34_s10, 2048  ;;  %p834_p4 = scmp.lt.s32.totalorder %s34_s10, %s34_s10 }
   0xb   :  { %p830_p3 = scmp.ne.s32.totalorder %s34_s10, %s829_s18  ;;  %p835_p5 = scmp.lt.s32.totalorder %s829_s18, %s829_s18 }
   0xd   :  { %p836_p6 = por %p835_p5, %p834_p4 }
   0xf   :  { %p837_p7 = pnand %p836_p6, %p830_p3 }
  0x11   :  { %840 = shalt.err (!%p837_p7)
}
  0x12   :  { %s960_s19 = smov 128   ;;  %s961_s20 = smov 8  }
  0x13   :  { %39 = dma.hbm_to_vmem [thread:$0]  %s1161_s1, 2048, %s34_s10, [#allocation6], %s960_s19, %s960_s19, %s961_s20  }
  0x14   :  { %s962_s23 = smov [#allocation8]   ;;  %s963_s25 = smov [#allocation2]  }
  0x15   :  { %s61_s24 = sshll.u32 %s962_s23, 4  ;;  %s24_s26 = sshll.u32 %s963_s25, 4  ;;  %s62_s24 = int_to_ptr.vmem [resolvable:$true] %s61_s24  ;;  %s25_s26 = int_to_ptr.vmem [resolvable:$true] %s24_s26 }
  0x16   :  { %s841_s29 = scalar_lea.hbm %s1165_s5, 2048 }
  0x17   :  { %p842_p8 = scmp.ne.s32.totalorder %s1165_s5, %s841_s29  ;;  %p845_p9 = scmp.lt.u32.totalorder %s841_s29, %s1165_s5 }
  0x19   :  { %p847_p10 = pnand %p845_p9, %p842_p8 }
  0x1b   :  { %850 = shalt.err (!%p847_p10)
}
  0x1c   :  { %s851_s1 = scalar_lea.vmem %s62_s24, 2048  ;;  %p856_p12 = scmp.lt.s32.totalorder %s62_s24, %s62_s24 }
  0x1d   :  { %p852_p11 = scmp.ne.s32.totalorder %s62_s24, %s851_s1  ;;  %p857_p13 = scmp.lt.s32.totalorder %s851_s1, %s851_s1 }
  0x1f   :  { %p858_p0 = por %p857_p13, %p856_p12 }
  0x21   :  { %p859_p1 = pnand %p858_p0, %p852_p11 }
  0x23   :  { %862 = shalt.err (!%p859_p1)
}
  0x24   :  { %67 = dma.hbm_to_vmem [thread:$0]  %s1165_s5, 2048, %s62_s24, [#allocation9], %s960_s19, %s960_s19, %s961_s20  }
  0x25   :  { %s863_s17 = scalar_lea.hbm %s1160_s0, 128 }
  0x26   :  { %p864_p2 = scmp.ne.s32.totalorder %s1160_s0, %s863_s17  ;;  %p867_p3 = scmp.lt.u32.totalorder %s863_s17, %s1160_s0 }
  0x28   :  { %p869_p4 = pnand %p867_p3, %p864_p2 }
  0x2a   :  { %872 = shalt.err (!%p869_p4)
}
  0x2b   :  { %s873_s25 = scalar_lea.vmem %s25_s26, 128  ;;  %p878_p6 = scmp.lt.s32.totalorder %s25_s26, %s25_s26 }
  0x2c   :  { %p874_p5 = scmp.ne.s32.totalorder %s25_s26, %s873_s25  ;;  %p879_p7 = scmp.lt.s32.totalorder %s873_s25, %s873_s25 }
  0x2e   :  { %p880_p8 = por %p879_p7, %p878_p6 }
  0x30   :  { %p881_p9 = pnand %p880_p8, %p874_p5 }
  0x32   :  { %884 = shalt.err (!%p881_p9)
}
  0x33   :  { %27 = dma.hbm_to_vmem [thread:$0]  %s1160_s0, 128, %s25_s26, [#allocation3]  }
  0x34   :  { %s964_s27 = smov [#allocation7]   ;;  %s965_s29 = smov [#allocation10]  }
  0x35   :  { %s47_s28 = sshll.u32 %s964_s27, 4  ;;  %s75_s30 = sshll.u32 %s965_s29, 4  ;;  %s48_s28 = int_to_ptr.vmem [resolvable:$true] %s47_s28  ;;  %s76_s30 = int_to_ptr.vmem [resolvable:$true] %s75_s30 }
  0x36   :  { %s885_s13 = scalar_lea.hbm %s1163_s3, 2048 }
  0x37   :  { %p886_p10 = scmp.ne.s32.totalorder %s1163_s3, %s885_s13  ;;  %p889_p11 = scmp.lt.u32.totalorder %s885_s13, %s1163_s3 }
  0x39   :  { %p891_p12 = pnand %p889_p11, %p886_p10 }
  0x3b   :  { %894 = shalt.err (!%p891_p12)
}
  0x3c   :  { %s895_s0 = scalar_lea.vmem %s48_s28, 2048  ;;  %p900_p0 = scmp.lt.s32.totalorder %s48_s28, %s48_s28 }
  0x3d   :  { %p896_p13 = scmp.ne.s32.totalorder %s48_s28, %s895_s0  ;;  %p901_p1 = scmp.lt.s32.totalorder %s895_s0, %s895_s0 }
  0x3f   :  { %p902_p2 = por %p901_p1, %p900_p0 }
  0x41   :  { %p903_p3 = pnand %p902_p2, %p896_p13 }
  0x43   :  { %906 = shalt.err (!%p903_p3)
}
  0x44   :  { %53 = dma.hbm_to_vmem [thread:$0]  %s1163_s3, 2048, %s48_s28, [#allocation6], %s960_s19, %s960_s19, %s961_s20  }
  0x45   :  { %s907_s21 = scalar_lea.hbm %s1167_s7, 2048 }
  0x46   :  { %p908_p4 = scmp.ne.s32.totalorder %s1167_s7, %s907_s21  ;;  %p911_p5 = scmp.lt.u32.totalorder %s907_s21, %s1167_s7 }
  0x48   :  { %p913_p6 = pnand %p911_p5, %p908_p4 }
  0x4a   :  { %916 = shalt.err (!%p913_p6)
}
  0x4b   :  { %s917_s24 = scalar_lea.vmem %s76_s30, 2048  ;;  %p922_p8 = scmp.lt.s32.totalorder %s76_s30, %s76_s30 }
  0x4c   :  { %p918_p7 = scmp.ne.s32.totalorder %s76_s30, %s917_s24  ;;  %p923_p9 = scmp.lt.s32.totalorder %s917_s24, %s917_s24 }
  0x4e   :  { %p924_p10 = por %p923_p9, %p922_p8 }
  0x50   :  { %p925_p11 = pnand %p924_p10, %p918_p7 }
  0x52   :  { %928 = shalt.err (!%p925_p11)
}
  0x53   :  { %81 = dma.hbm_to_vmem [thread:$0]  %s1167_s7, 2048, %s76_s30, [#allocation9], %s960_s19, %s960_s19, %s961_s20  }
  0x54   :  { %951 = dma.done.wait [#allocation3], 128  }
  0x55   :  { %952 = vsyncadd [#allocation3], 4294967168 }
  0x56   :  { %953 = dma.done.wait [#allocation6], 4096  }
  0x57   :  { %954 = vsyncadd [#allocation6], 4294963200 }
  0x58   :  { %955 = dma.done.wait [#allocation9], 4096  }
  0x59   :  { %956 = vsyncadd [#allocation9], 4294963200  ;;  %v966_v0 = vmov 0.0|0.0   ;;  %vm967_vm0 = vmmov 0   ;;  %v968_v1 = vmov 0.0   ;;  %v100_v2 = vld [vmem:[#allocation5] sm:$0xff] }
  0x5a   :  { %712 = vmatprep.subr.bf16.mxu0 %v966_v0  ;;  %604 = vmatprep.mubr.msk.f32.mxu0 %vm967_vm0, %v968_v1  ;;  %v101_v3 = vld [vmem:[#allocation5 + $0x8] sm:$0xff]  ;;  %v102_v4 = vld [vmem:[#allocation5 + $0x10] sm:$0xff]  ;;  %v103_v6 = vld [vmem:[#allocation5 + $0x18] sm:$0xff]  ;;  %s969_s11 = smov [#allocation11]  }
  0x5b   :  { %736 = vmatprep.subr.bf16.mxu1 %v966_v0  ;;  %639 = vmatprep.mubr.msk.f32.mxu1 %vm967_vm0, %v968_v1  ;;  %v713_v5 = vpack.c.bf16 %v101_v3, %v100_v2  ;;  %v716_v7 = vpack.c.bf16 %v103_v6, %v102_v4  ;;  %v104_v8 = vld [vmem:[#allocation5 + $0x20] sm:$0xff]  ;;  %v105_v9 = vld [vmem:[#allocation5 + $0x28] sm:$0xff]  ;;  %v198_v12 = vld [vmem:[#allocation7 + $0x10] sm:$0xff]  ;;  %s489_s12 = sshll.u32 %s969_s11, 4  ;;  %s490_s12 = int_to_ptr.vmem [resolvable:$true] %s489_s12 }
  0x5c   :  { %v196_v10 = vld [vmem:[#allocation7] sm:$0xff]  ;;  %v197_v11 = vld [vmem:[#allocation7 + $0x8] sm:$0xff]  ;;  %v199_v13 = vld [vmem:[#allocation7 + $0x18] sm:$0xff]  ;;  %v719_v14 = vpack.c.bf16 %v105_v9, %v104_v8  ;;  %p934_p13 = scmp.lt.s32.totalorder %s490_s12, %s490_s12 }
  0x5d   :  { %714 = vmatpush3.bf16.msra.mxu0 %v713_v5  ;;  %v737_v15 = vpack.c.bf16 %v197_v11, %v196_v10  ;;  %v106_v16 = vld [vmem:[#allocation5 + $0x30] sm:$0xff]  ;;  %v107_v17 = vld [vmem:[#allocation5 + $0x38] sm:$0xff]  ;;  %v740_v18 = vpack.c.bf16 %v199_v13, %v198_v12  ;;  %v200_v19 = vld [vmem:[#allocation7 + $0x20] sm:$0xff] }
  0x5e   :  { %715 = vmatprep.subr.bf16.mxu0 %v966_v0  ;;  %v201_v20 = vld [vmem:[#allocation7 + $0x28] sm:$0xff]  ;;  %v722_v21 = vpack.c.bf16 %v107_v17, %v106_v16  ;;  %v108_v22 = vld [vmem:[#allocation5 + $0x40] sm:$0xff]  ;;  %v202_v25 = vld [vmem:[#allocation7 + $0x30] sm:$0xff] }
  0x5f   :  { %738 = vmatpush3.bf16.msra.mxu1 %v737_v15  ;;  %v109_v23 = vld [vmem:[#allocation5 + $0x48] sm:$0xff]  ;;  %v743_v24 = vpack.c.bf16 %v201_v20, %v200_v19  ;;  %v203_v26 = vld [vmem:[#allocation7 + $0x38] sm:$0xff]  ;;  %v110_v28 = vld [vmem:[#allocation5 + $0x50] sm:$0xff] }
  0x60   :  { %739 = vmatprep.subr.bf16.mxu1 %v966_v0  ;;  %v725_v27 = vpack.c.bf16 %v109_v23, %v108_v22  ;;  %v111_v29 = vld [vmem:[#allocation5 + $0x58] sm:$0xff]  ;;  %v746_v30 = vpack.c.bf16 %v203_v26, %v202_v25  ;;  %v204_v31 = vld [vmem:[#allocation7 + $0x40] sm:$0xff]  ;;  %v205_v32 = vld [vmem:[#allocation7 + $0x48] sm:$0xff] }
  0x61   :  { %717 = vmatpush3.bf16.msra.mxu0 %v716_v7  ;;  %v728_v33 = vpack.c.bf16 %v111_v29, %v110_v28  ;;  %v112_v34 = vld [vmem:[#allocation5 + $0x60] sm:$0xff]  ;;  %v113_v35 = vld [vmem:[#allocation5 + $0x68] sm:$0xff]  ;;  %v749_v36 = vpack.c.bf16 %v205_v32, %v204_v31  ;;  %v206_v37 = vld [vmem:[#allocation7 + $0x50] sm:$0xff] }
  0x62   :  { %718 = vmatprep.subr.bf16.mxu0 %v966_v0  ;;  %v207_v38 = vld [vmem:[#allocation7 + $0x58] sm:$0xff]  ;;  %v731_v39 = vpack.c.bf16 %v113_v35, %v112_v34  ;;  %v114_v40 = vld [vmem:[#allocation5 + $0x70] sm:$0xff]  ;;  %v208_v43 = vld [vmem:[#allocation7 + $0x60] sm:$0xff] }
  0x63   :  { %741 = vmatpush3.bf16.msra.mxu1 %v740_v18  ;;  %v115_v41 = vld [vmem:[#allocation5 + $0x78] sm:$0xff]  ;;  %v752_v42 = vpack.c.bf16 %v207_v38, %v206_v37  ;;  %v209_v44 = vld [vmem:[#allocation7 + $0x68] sm:$0xff]  ;;  %v210_v48 = vld [vmem:[#allocation7 + $0x70] sm:$0xff] }
  0x64   :  { %742 = vmatprep.subr.bf16.mxu1 %v966_v0  ;;  %v734_v45 = vpack.c.bf16 %v115_v41, %v114_v40  ;;  %v755_v46 = vpack.c.bf16 %v209_v44, %v208_v43  ;;  %v1111_v47 = vld [vmem:[#allocation2] sm:$0xff]  ;;  %v292_v51 = vld [vmem:[#allocation8] sm:$0xff]  ;;  %v293_v52 = vld [vmem:[#allocation8 + $0x8] sm:$0xff] }
  0x65   :  { %720 = vmatpush3.bf16.msra.mxu0 %v719_v14  ;;  %v211_v49 = vld [vmem:[#allocation7 + $0x78] sm:$0xff]  ;;  %v294_v53 = vld [vmem:[#allocation8 + $0x10] sm:$0xff]  ;;  %v761_v54 = vpack.c.bf16 %v293_v52, %v292_v51  ;;  %v296_v57 = vld [vmem:[#allocation8 + $0x20] sm:$0xff] }
  0x66   :  { %721 = vmatprep.subr.bf16.mxu0 %v966_v0  ;;  %v758_v50 = vpack.c.bf16 %v211_v49, %v210_v48  ;;  %v295_v55 = vld [vmem:[#allocation8 + $0x18] sm:$0xff]  ;;  %v297_v58 = vld [vmem:[#allocation8 + $0x28] sm:$0xff]  ;;  %v298_v60 = vld [vmem:[#allocation8 + $0x30] sm:$0xff] }
  0x67   :  { %744 = vmatpush3.bf16.msra.mxu1 %v743_v24  ;;  %v764_v56 = vpack.c.bf16 %v295_v55, %v294_v53  ;;  %v767_v59 = vpack.c.bf16 %v297_v58, %v296_v57  ;;  %v299_v61 = vld [vmem:[#allocation8 + $0x38] sm:$0xff]  ;;  %v300_v63 = vld [vmem:[#allocation8 + $0x40] sm:$0xff]  ;;  %v301_v2 = vld [vmem:[#allocation8 + $0x48] sm:$0xff] }
  0x68   :  { %745 = vmatprep.subr.bf16.mxu1 %v966_v0  ;;  %v770_v62 = vpack.c.bf16 %v299_v61, %v298_v60  ;;  %v773_v3 = vpack.c.bf16 %v301_v2, %v300_v63  ;;  %v302_v4 = vld [vmem:[#allocation8 + $0x50] sm:$0xff]  ;;  %v303_v5 = vld [vmem:[#allocation8 + $0x58] sm:$0xff]  ;;  %v304_v7 = vld [vmem:[#allocation8 + $0x60] sm:$0xff] }
  0x69   :  { %723 = vmatpush3.bf16.msra.mxu0 %v722_v21  ;;  %v776_v6 = vpack.c.bf16 %v303_v5, %v302_v4  ;;  %v305_v8 = vld [vmem:[#allocation8 + $0x68] sm:$0xff]  ;;  %v500_v10 = vld [vmem:[%s1162_s2] ss:$0 sm:$0xff]  ;;  %v306_v16 = vld [vmem:[#allocation8 + $0x70] sm:$0xff] }
  0x6a   :  { %724 = vmatprep.subr.bf16.mxu0 %v966_v0  ;;  %v779_v9 = vpack.c.bf16 %v305_v8, %v304_v7  ;;  %v307_v17 = vld [vmem:[#allocation8 + $0x78] sm:$0xff]  ;;  %v388_v19 = vld [vmem:[#allocation10] sm:$0xff]  ;;  %v389_v20 = vld [vmem:[#allocation10 + $0x8] sm:$0xff] }
  0x6b   :  { %747 = vmatpush3.bf16.msra.mxu1 %v746_v30  ;;  %v782_v18 = vpack.c.bf16 %v307_v17, %v306_v16  ;;  %v390_v21 = vld [vmem:[#allocation10 + $0x10] sm:$0xff]  ;;  %v785_v22 = vpack.c.bf16 %v389_v20, %v388_v19  ;;  %v391_v23 = vld [vmem:[#allocation10 + $0x18] sm:$0xff]  ;;  %v392_v25 = vld [vmem:[#allocation10 + $0x20] sm:$0xff] }
  0x6c   :  { %748 = vmatprep.subr.bf16.mxu1 %v966_v0  ;;  %v788_v24 = vpack.c.bf16 %v391_v23, %v390_v21  ;;  %v393_v26 = vld [vmem:[#allocation10 + $0x28] sm:$0xff]  ;;  %v395_v28 = vld [vmem:[#allocation10 + $0x38] sm:$0xff]  ;;  %v396_v30 = vld [vmem:[#allocation10 + $0x40] sm:$0xff] }
  0x6d   :  { %726 = vmatpush3.bf16.msra.mxu0 %v725_v27  ;;  %v791_v27 = vpack.c.bf16 %v393_v26, %v392_v25  ;;  %v397_v31 = vld [vmem:[#allocation10 + $0x48] sm:$0xff]  ;;  %v399_v34 = vld [vmem:[#allocation10 + $0x58] sm:$0xff] }
  0x6e   :  { %727 = vmatprep.subr.bf16.mxu0 %v966_v0  ;;  %v797_v32 = vpack.c.bf16 %v397_v31, %v396_v30  ;;  %v401_v37 = vld [vmem:[#allocation10 + $0x68] sm:$0xff]  ;;  %v502_v49 = vld [vmem:[%s1166_s6] ss:$0 sm:$0xff]  ;;  %s929_s6 = scalar_lea.vmem %s490_s12, 128 }
  0x6f   :  { %750 = vmatpush3.bf16.msra.mxu1 %v749_v36  ;;  %v400_v36 = vld [vmem:[#allocation10 + $0x60] sm:$0xff]  ;;  %p930_p12 = scmp.ne.s32.totalorder %s490_s12, %s929_s6  ;;  %p935_p0 = scmp.lt.s32.totalorder %s929_s6, %s929_s6 }
  0x70   :  { %751 = vmatprep.subr.bf16.mxu1 %v966_v0  ;;  %v803_v38 = vpack.c.bf16 %v401_v37, %v400_v36 }
  0x71   :  { %729 = vmatpush3.bf16.msra.mxu0 %v728_v33  ;;  %v398_v33 = vld [vmem:[#allocation10 + $0x50] sm:$0xff]  ;;  %p936_p1 = por %p935_p0, %p934_p13 }
  0x72   :  { %730 = vmatprep.subr.bf16.mxu0 %v966_v0  ;;  %v800_v35 = vpack.c.bf16 %v399_v34, %v398_v33 }
  0x73   :  { %753 = vmatpush3.bf16.msra.mxu1 %v752_v42  ;;  %p937_p2 = pnand %p936_p1, %p930_p12 }
  0x74   :  { %754 = vmatprep.subr.bf16.mxu1 %v966_v0 }
  0x75   :  { %732 = vmatpush3.bf16.msra.mxu0 %v731_v39  ;;  %v501_v39 = vld [vmem:[%s1164_s4] ss:$0 sm:$0xff] }
  0x76   :  { %733 = vmatprep.subr.bf16.mxu0 %v966_v0 }
  0x77   :  { %756 = vmatpush3.bf16.msra.mxu1 %v755_v46  ;;  %v403_v46 = vld [vmem:[#allocation10 + $0x78] sm:$0xff] }
  0x78   :  { %757 = vmatprep.subr.bf16.mxu1 %v966_v0 }
  0x79   :  { %735 = vmatpush3.bf16.msra.mxu0 %v734_v45  ;;  %v402_v45 = vld [vmem:[#allocation10 + $0x70] sm:$0xff] }
  0x7a   :  { %760 = vmatprep.subr.bf16.mxu0 %v966_v0  ;;  %v806_v48 = vpack.c.bf16 %v403_v46, %v402_v45 }
  0x7b   :  { %759 = vmatpush3.bf16.msra.mxu1 %v758_v50 }
  0x7c   :  { %605 = vmatmul.mubr.f32.vlgmr.msra.gmra.mrb[0].mxu0 %v1111_v47  ;;  %784 = vmatprep.subr.bf16.mxu1 %v966_v0 }
  0x7d   :  { %674 = vmatprep.mubr.msk.f32.mxu0 %vm967_vm0, %v968_v1  ;;  %762 = vmatpush3.bf16.msra.mxu0 %v761_v54  ;;  %v503_v54 = vld [vmem:[%s1168_s8] ss:$0 sm:$0xff] }
  0x7e   :  { %763 = vmatprep.subr.bf16.mxu0 %v966_v0 }
  0x81   :  { %765 = vmatpush3.bf16.msra.mxu0 %v764_v56 }
  0x82   :  { %766 = vmatprep.subr.bf16.mxu0 %v966_v0 }
  0x85   :  { %768 = vmatpush3.bf16.msra.mxu0 %v767_v59 }
  0x86   :  { %769 = vmatprep.subr.bf16.mxu0 %v966_v0 }
  0x89   :  { %771 = vmatpush3.bf16.msra.mxu0 %v770_v62 }
  0x8a   :  { %772 = vmatprep.subr.bf16.mxu0 %v966_v0 }
  0x8d   :  { %774 = vmatpush3.bf16.msra.mxu0 %v773_v3 }
  0x8e   :  { %775 = vmatprep.subr.bf16.mxu0 %v966_v0 }
  0x91   :  { %777 = vmatpush3.bf16.msra.mxu0 %v776_v6 }
  0x92   :  { %778 = vmatprep.subr.bf16.mxu0 %v966_v0 }
  0x95   :  { %780 = vmatpush3.bf16.msra.mxu0 %v779_v9 }
  0x96   :  { %781 = vmatprep.subr.bf16.mxu0 %v966_v0 }
  0x99   :  { %783 = vmatpush3.bf16.msra.mxu0 %v782_v18 }
 0x14f   :  { %v189_v11 = vpop.f32.mrb[0].mxu0 }
 0x150   :  { %v190_v12 = vadd.f32 %v500_v10, %v189_v11  ;;  %v606_v13 = vpop.f32.mrb[1].mxu0 }
 0x152   :  { %v194_v14 = vmul.f32 0.1, %v190_v12  ;;  %vm193_vm1 = vcmp.gt.f32.partialorder %v190_v12, 0.0 }
 0x154   :  { %v195_v15 = vsel %vm193_vm1, %v190_v12, %v194_v14 }
 0x155   :  { %640 = vmatmul.mubr.f32.vlgmr.msra.gmra.mrb[0].mxu1 %v195_v15 }
 0x156   :  { %709 = vmatprep.mubr.msk.f32.mxu1 %vm967_vm0, %v968_v1  ;;  %786 = vmatpush3.bf16.msra.mxu1 %v785_v22  ;;  %v394_v1 = vld [vmem:[#allocation10 + $0x30] sm:$0xff] }
 0x157   :  { %787 = vmatprep.subr.bf16.mxu1 %v966_v0  ;;  %v794_v29 = vpack.c.bf16 %v395_v28, %v394_v1 }
 0x15a   :  { %789 = vmatpush3.bf16.msra.mxu1 %v788_v24 }
 0x15b   :  { %790 = vmatprep.subr.bf16.mxu1 %v966_v0 }
 0x15e   :  { %792 = vmatpush3.bf16.msra.mxu1 %v791_v27 }
 0x15f   :  { %793 = vmatprep.subr.bf16.mxu1 %v966_v0 }
 0x162   :  { %795 = vmatpush3.bf16.msra.mxu1 %v794_v29 }
 0x163   :  { %796 = vmatprep.subr.bf16.mxu1 %v966_v0 }
 0x166   :  { %798 = vmatpush3.bf16.msra.mxu1 %v797_v32 }
 0x167   :  { %799 = vmatprep.subr.bf16.mxu1 %v966_v0 }
 0x16a   :  { %801 = vmatpush3.bf16.msra.mxu1 %v800_v35 }
 0x16b   :  { %802 = vmatprep.subr.bf16.mxu1 %v966_v0 }
 0x16e   :  { %804 = vmatpush3.bf16.msra.mxu1 %v803_v38 }
 0x16f   :  { %805 = vmatprep.subr.bf16.mxu1 %v966_v0 }
 0x172   :  { %807 = vmatpush3.bf16.msra.mxu1 %v806_v48 }
 0x228   :  { %v285_v40 = vpop.f32.mrb[0].mxu1 }
 0x229   :  { %v286_v41 = vadd.f32 %v501_v39, %v285_v40  ;;  %v641_v42 = vpop.f32.mrb[1].mxu1 }
 0x22b   :  { %vm289_vm2 = vcmp.gt.f32.partialorder %v286_v41, 0.0  ;;  %v290_v43 = vmul.f32 0.1, %v286_v41 }
 0x22d   :  { %v291_v44 = vsel %vm289_vm2, %v286_v41, %v290_v43 }
 0x22e   :  { %675 = vmatmul.mubr.f32.vlgmr.msra.gmra.mrb[2].mxu0 %v291_v44 }
 0x301   :  { %v381_v0 = vpop.f32.mrb[2].mxu0 }
 0x302   :  { %v382_v50 = vadd.f32 %v502_v49, %v381_v0  ;;  %v676_v51 = vpop.f32.mrb[3].mxu0 }
 0x304   :  { %vm385_vm3 = vcmp.gt.f32.partialorder %v382_v50, 0.0  ;;  %v386_v52 = vmul.f32 0.1, %v382_v50 }
 0x306   :  { %v387_v53 = vsel %vm385_vm3, %v382_v50, %v386_v52 }
 0x307   :  { %710 = vmatmul.mubr.f32.vlgmr.msra.gmra.mrb[2].mxu1 %v387_v53 }
 0x3da   :  { %v477_v55 = vpop.f32.mrb[2].mxu1 }
 0x3db   :  { %v478_v56 = vadd.f32 %v503_v54, %v477_v55  ;;  %v711_v57 = vpop.f32.mrb[3].mxu1 }
 0x3dd   :  { %v481_v58 = vadd.f32 %v478_v56, %v1111_v47 }
 0x3df   :  { %482 = vst [vmem:[#allocation11] sm:$0xff] %v481_v58 }
 0x3e0   :  { %940 = shalt.err (!%p937_p2)
}
 0x3e1   :  { %s941_s8 = scalar_lea.hbm %s1169_s9, 128 }
 0x3e2   :  { %p942_p3 = scmp.ne.s32.totalorder %s1169_s9, %s941_s8  ;;  %p945_p4 = scmp.lt.u32.totalorder %s941_s8, %s1169_s9 }
 0x3e4   :  { %p947_p5 = pnand %p945_p4, %p942_p3 }
 0x3e6   :  { %950 = shalt.err (!%p947_p5)
}
 0x3e7   :  { %492 = dma.vmem_to_hbm [thread:$0]  %s490_s12, 128, %s1169_s9, [#allocation4]  }
 0x3e8   :  { %957 = dma.done.wait [#allocation4], 128  }
 0x3e9   :  { %958 = vsyncadd [#allocation4], 4294967168 }
 0x3ea   :  { %496 = vsyncpa [#allocation3], 1 }
 0x3eb   :  { %497 = vsyncpa [#allocation6], 1 }
 0x3ec   :  { %498 = vsyncpa [#allocation9], 1 }
 0x3ed   :  { %499 = vsyncpa [#allocation4], 1 }

</bundles_post_ra>
